<compile_context>
chip_gen: v7x
topology: tpu7x:2x2x1
jax: 0.10.0
libtpu: 0.0.40
codegen_flags: <defaults>
</compile_context>

<pallas_src>
import functools

import jax
import jax.numpy as jnp
from jax.experimental import pallas as pl
from jax.experimental.pallas import tpu as pltpu

EPS = 1e-6

_TM_MAX = 512                     # rows per M-tile cap (mem-bound roofline sweet spot)
_VMEM_LIMIT = 48 * 1024 * 1024    # explicit scoped-VMEM limit, headroom on v7x (64 MiB)


# ---------------------------------------------------------------------------
# Kernels
# ---------------------------------------------------------------------------

def _qkv_kernel(x_ref, nw_ref, w_ref, o_ref):
    """o = (rmsnorm(x) * nw) @ w_qkv   (packed, lane-padded QKV projection)."""
    x = x_ref[...].astype(jnp.float32)
    inv = jax.lax.rsqrt(jnp.mean(x * x, axis=-1, keepdims=True) + EPS)
    n = x * inv * nw_ref[...]
    o_ref[...] = jnp.dot(n, w_ref[...],
                         preferred_element_type=jnp.float32).astype(o_ref.dtype)


def _attention_kernel(qkv_ref, cos_ref, sin_ref, o_ref, *, n_head, dk, dv):
    """Per-batch: fused RoPE + softmax attention over all heads (mask=None path).

    qkv_ref block: (1, S, Npad) with column layout [Q | K | V | pad];
    Q/K columns are de-interleaved per head (evens first, odds second) so RoPE
    is a rotate-half on lane halves. The 1/d_model scale is folded into Q weights.
    """
    dk2 = dk // 2
    hdk = n_head * dk
    cos = cos_ref[...]            # (S, dk//2)
    sin = sin_ref[...]

    def rope(x):                  # x: (S, dk) in [even | odd] half layout
        xe, xo = x[:, :dk2], x[:, dk2:]
        return jnp.concatenate([xe * cos - xo * sin, xe * sin + xo * cos], axis=-1)

    for h in range(n_head):       # static unroll over heads
        q = rope(qkv_ref[0, :, h * dk:(h + 1) * dk].astype(jnp.float32))
        k = rope(qkv_ref[0, :, hdk + h * dk: hdk + (h + 1) * dk].astype(jnp.float32))
        v = qkv_ref[0, :, 2 * hdk + h * dv: 2 * hdk + (h + 1) * dv].astype(jnp.float32)
        s = jax.lax.dot_general(q, k, (((1,), (1,)), ((), ())),
                                preferred_element_type=jnp.float32)       # (S, S)
        s = s - jnp.max(s, axis=-1, keepdims=True)
        p = jnp.exp(s)
        attn = p * pl.reciprocal(jnp.sum(p, axis=-1, keepdims=True), approx=True)
        o_ref[0, :, h * dv:(h + 1) * dv] = jnp.dot(
            attn, v, preferred_element_type=jnp.float32).astype(o_ref.dtype)


def _out_ffn_kernel(x_ref, a_ref, wo_ref, nw_ref, w1_ref, b1_ref, w3_ref, b3_ref,
                    w2_ref, b2_ref, o_ref):
    """h = x + a @ w_out ; o = h + (silu(n@w1+b1) * (n@w3+b3)) @ w2 + b2,
    with n = rmsnorm(h) * nw.  h never leaves VMEM."""
    x = x_ref[...].astype(jnp.float32)
    h = x + jnp.dot(a_ref[...].astype(jnp.float32), wo_ref[...],
                    preferred_element_type=jnp.float32)
    inv = jax.lax.rsqrt(jnp.mean(h * h, axis=-1, keepdims=True) + EPS)
    n = h * inv * nw_ref[...]
    a1 = jnp.dot(n, w1_ref[...], preferred_element_type=jnp.float32) + b1_ref[...]
    a3 = jnp.dot(n, w3_ref[...], preferred_element_type=jnp.float32) + b3_ref[...]
    g = a1 * pl.reciprocal(1.0 + jnp.exp(-a1), approx=True) * a3       # SiLU(a1)*a3
    out = jnp.dot(g, w2_ref[...], preferred_element_type=jnp.float32) + b2_ref[...]
    o_ref[...] = (out + h).astype(o_ref.dtype)


# ---------------------------------------------------------------------------
# pallas_call wrappers (ragged M-tiling, "parallel" grid, resident weights)
# ---------------------------------------------------------------------------

def _choose_tm(M):
    """>=2 tiles whenever M allows (v7x 2 TCs), multiples of 8, capped at _TM_MAX."""
    if M <= 8:
        return M
    tm = min(_TM_MAX, pl.cdiv(M, 2))
    return max(8, (tm // 8) * 8)


def qkv_projection(x2d, norm_w, w_qkv):
    M, D = x2d.shape
    N = w_qkv.shape[1]
    tm = _choose_tm(M)
    return pl.pallas_call(
        _qkv_kernel,
        out_shape=jax.ShapeDtypeStruct((M, N), x2d.dtype),
        grid_spec=pl.GridSpec(
            grid=(pl.cdiv(M, tm),),
            in_specs=[pl.BlockSpec((tm, D), lambda i: (i, 0)),
                      pl.BlockSpec((1, D), lambda i: (0, 0)),
                      pl.BlockSpec((D, N), lambda i: (0, 0))],
            out_specs=pl.BlockSpec((tm, N), lambda i: (i, 0)),
        ),
        compiler_params=pltpu.CompilerParams(
            dimension_semantics=("parallel",),
            vmem_limit_bytes=_VMEM_LIMIT),
        cost_estimate=pl.CostEstimate(
            flops=2 * M * D * N,
            transcendentals=M,
            bytes_accessed=4 * (M * D + D * N + M * N)),
    )(x2d, norm_w, w_qkv)


def attention(qkv3, cos, sin, *, n_head, dk, dv):
    B, S, Np = qkv3.shape
    kern = functools.partial(_attention_kernel, n_head=n_head, dk=dk, dv=dv)
    return pl.pallas_call(
        kern,
        out_shape=jax.ShapeDtypeStruct((B, S, n_head * dv), qkv3.dtype),
        grid_spec=pl.GridSpec(
            grid=(B,),
            in_specs=[pl.BlockSpec((1, S, Np), lambda b: (b, 0, 0)),
                      pl.BlockSpec((S, dk // 2), lambda b: (0, 0)),
                      pl.BlockSpec((S, dk // 2), lambda b: (0, 0))],
            out_specs=pl.BlockSpec((1, S, n_head * dv), lambda b: (b, 0, 0)),
        ),
        compiler_params=pltpu.CompilerParams(
            dimension_semantics=("parallel",),
            vmem_limit_bytes=_VMEM_LIMIT),
        cost_estimate=pl.CostEstimate(
            flops=2 * B * n_head * S * S * (dk + dv),
            transcendentals=B * n_head * S * S,
            bytes_accessed=4 * B * S * (Np + n_head * dv)),
    )(qkv3, cos, sin)


def out_proj_ffn(x2d, attn2d, p):
    M, D = x2d.shape
    HDv = attn2d.shape[1]
    Hid = p["w1"].shape[1]
    tm = _choose_tm(M)
    return pl.pallas_call(
        _out_ffn_kernel,
        out_shape=jax.ShapeDtypeStruct((M, D), x2d.dtype),
        grid_spec=pl.GridSpec(
            grid=(pl.cdiv(M, tm),),
            in_specs=[pl.BlockSpec((tm, D), lambda i: (i, 0)),
                      pl.BlockSpec((tm, HDv), lambda i: (i, 0)),
                      pl.BlockSpec((HDv, D), lambda i: (0, 0)),
                      pl.BlockSpec((1, D), lambda i: (0, 0)),
                      pl.BlockSpec((D, Hid), lambda i: (0, 0)),
                      pl.BlockSpec((1, Hid), lambda i: (0, 0)),
                      pl.BlockSpec((D, Hid), lambda i: (0, 0)),
                      pl.BlockSpec((1, Hid), lambda i: (0, 0)),
                      pl.BlockSpec((Hid, D), lambda i: (0, 0)),
                      pl.BlockSpec((1, D), lambda i: (0, 0))],
            out_specs=pl.BlockSpec((tm, D), lambda i: (i, 0)),
        ),
        compiler_params=pltpu.CompilerParams(
            dimension_semantics=("parallel",),
            vmem_limit_bytes=_VMEM_LIMIT),
        cost_estimate=pl.CostEstimate(
            flops=2 * M * (HDv * D + 3 * D * Hid),
            transcendentals=M * (Hid + 1),
            bytes_accessed=4 * (2 * M * D + M * HDv + HDv * D + 3 * D * Hid
                                + 2 * Hid + D)),
    )(x2d, attn2d, p["w_out"], p["ffn_norm_w"], p["w1"], p["b1"],
      p["w3"], p["b3"], p["w2"], p["b2"])


# ---------------------------------------------------------------------------
# RoPE tables + interleaved rotation (reference only; kernel uses rotate-half)
# ---------------------------------------------------------------------------

def precompute_rope(head_dim, max_len=5000, theta=10000.0):
    freqs = 1.0 / theta ** (
        jnp.arange(0, head_dim, 2)[: head_dim // 2].astype(jnp.float32) / head_dim)
    t = jnp.arange(max_len, dtype=jnp.float32)
    ang = jnp.outer(t, freqs)
    return jnp.cos(ang), jnp.sin(ang)


def apply_rope_interleaved(x, cos, sin):
    # x: (B, S, H, Dk); matches torch view_as_complex pair rotation (reference path).
    B, S, H, Dk = x.shape
    xr = x.astype(jnp.float32).reshape(B, S, H, Dk // 2, 2)
    x0, x1 = xr[..., 0], xr[..., 1]
    c = cos[None, :, None, :]
    s = sin[None, :, None, :]
    r0 = x0 * c - x1 * s
    r1 = x0 * s + x1 * c
    return jnp.stack([r0, r1], axis=-1).reshape(B, S, H, Dk).astype(x.dtype)


# ---------------------------------------------------------------------------
# Parameter preparation (ONE-TIME: transpose, de-interleave RoPE pairs,
# fold 1/d_model into Q, pack QKV, lane-pad to 128)
# ---------------------------------------------------------------------------

def prepare_params(raw, *, n_head, q_k_dim, d_model, max_len=5000):
    Dk = q_k_dim
    p = {}
    p["attn_norm_w"] = raw["attn_norm_w"].reshape(1, -1)
    p["ffn_norm_w"] = raw["ffn_norm_w"].reshape(1, -1)

    # De-interleave (even, odd) RoPE pairs within each head -> rotate-half layout.
    # Q and K get the same per-head permutation, so Q·K scores are unchanged.
    perm = jnp.concatenate([jnp.arange(0, Dk, 2), jnp.arange(1, Dk, 2)])
    full_perm = jnp.concatenate([h * Dk + perm for h in range(n_head)])
    wq = raw["wq"][full_perm] / float(d_model)   # fold ScaleDotProduct's 1/d_model
    wk = raw["wk"][full_perm]

    w_qkv = jnp.concatenate([wq.T, wk.T, raw["wv"].T], axis=1)  # (D, 2*H*Dk + H*Dv)
    n_raw = w_qkv.shape[1]
    n_pad = ((n_raw + 127) // 128) * 128                        # lane-dense stores
    if n_pad != n_raw:
        w_qkv = jnp.pad(w_qkv, ((0, 0), (0, n_pad - n_raw)))
    p["w_qkv"] = w_qkv

    p["w_out"] = raw["w_out"].T
    p["w1"], p["w3"], p["w2"] = raw["w1"].T, raw["w3"].T, raw["w2"].T
    p["b1"] = raw["b1"].reshape(1, -1)
    p["b3"] = raw["b3"].reshape(1, -1)
    p["b2"] = raw["b2"].reshape(1, -1)
    p["rope_cos"], p["rope_sin"] = precompute_rope(Dk, max_len)
    return p


# ---------------------------------------------------------------------------
# TransformerBlock forward
# ---------------------------------------------------------------------------

def transformer_block_forward(x, params, *, n_head, q_k_dim, v_dim):
    B, S, D = x.shape
    M = B * S
    x2d = x.reshape(M, D)

    # (1) attention RMSNorm + packed (lane-padded) QKV projection
    qkv = qkv_projection(x2d, params["attn_norm_w"], params["w_qkv"])   # (M, Npad)
    qkv3 = qkv.reshape(B, S, qkv.shape[-1])                             # free reshape

    # (2) fused RoPE + softmax attention (all heads per batch step)
    cos = params["rope_cos"][:S]
    sin = params["rope_sin"][:S]
    attn3 = attention(qkv3, cos, sin, n_head=n_head, dk=q_k_dim, dv=v_dim)
    attn2d = attn3.reshape(M, n_head * v_dim)                           # free reshape

    # (3) output projection + residual + ffn RMSNorm + SwiGLU FFN + residual
    out2d = out_proj_ffn(x2d, attn2d, params)
    return out2d.reshape(B, S, D)


# ---------------------------------------------------------------------------
# Pure-JAX reference (mirrors the PyTorch module exactly, raw f32 weights)
# ---------------------------------------------------------------------------

def reference_forward(x, raw, cos, sin, *, d_model, n_head, q_k_dim, v_dim):
    def rms(t, w):
        return t * jax.lax.rsqrt(jnp.mean(t * t, -1, keepdims=True) + EPS) * w

    B, S, D = x.shape
    H, Dk, Dv = n_head, q_k_dim, v_dim
    nx = rms(x, raw["attn_norm_w"])
    Q = (nx @ raw["wq"].T).reshape(B, S, H, Dk)
    K = (nx @ raw["wk"].T).reshape(B, S, H, Dk)
    V = (nx @ raw["wv"].T).reshape(B, S, H, Dv)
    Q = apply_rope_interleaved(Q, cos[:S], sin[:S])
    K = apply_rope_interleaved(K, cos[:S], sin[:S])
    Qh, Kh, Vh = (t.transpose(0, 2, 1, 3) for t in (Q, K, V))
    attn = jnp.einsum("bhqd,bhkd->bhqk", Qh / d_model, Kh)
    attn = jax.nn.softmax(attn, axis=-1)
    o = jnp.einsum("bhqk,bhkd->bhqd", attn, Vh)
    o = o.transpose(0, 2, 1, 3).reshape(B, S, H * Dv)
    h = x + o @ raw["w_out"].T
    nh = rms(h, raw["ffn_norm_w"])
    g = jax.nn.silu(nh @ raw["w1"].T + raw["b1"]) * (nh @ raw["w3"].T + raw["b3"])
    return h + g @ raw["w2"].T + raw["b2"]


if __name__ == "__main__":
    # config: batch=2, seq=8, d_model=32, n_head=2, q_k_dim=v_dim=16, hidden=64
    B, S = 2, 8
    d_model, n_head, q_k_dim, v_dim = 32, 2, 16, 16
    hidden = 2 * d_model

    key = jax.random.PRNGKey(0)
    keys = jax.random.split(key, 13)
    x = jax.random.normal(keys[0], (B, S, d_model), dtype=jnp.float32)

    raw = {  # torch-layout weights: (out_features, in_features), biases (out,)
        "attn_norm_w": 1.0 + 0.1 * jax.random.normal(keys[1], (d_model,), jnp.float32),
        "ffn_norm_w": 1.0 + 0.1 * jax.random.normal(keys[2], (d_model,), jnp.float32),
        "wq": 0.1 * jax.random.normal(keys[3], (n_head * q_k_dim, d_model), jnp.float32),
        "wk": 0.1 * jax.random.normal(keys[4], (n_head * q_k_dim, d_model), jnp.float32),
        "wv": 0.1 * jax.random.normal(keys[5], (n_head * v_dim, d_model), jnp.float32),
        "w_out": 0.1 * jax.random.normal(keys[6], (d_model, n_head * v_dim), jnp.float32),
        "w1": 0.1 * jax.random.normal(keys[7], (hidden, d_model), jnp.float32),
        "b1": 0.1 * jax.random.normal(keys[8], (hidden,), jnp.float32),
        "w3": 0.1 * jax.random.normal(keys[9], (hidden, d_model), jnp.float32),
        "b3": 0.1 * jax.random.normal(keys[10], (hidden,), jnp.float32),
        "w2": 0.1 * jax.random.normal(keys[11], (d_model, hidden), jnp.float32),
        "b2": 0.1 * jax.random.normal(keys[12], (d_model,), jnp.float32),
    }

    params = prepare_params(raw, n_head=n_head, q_k_dim=q_k_dim, d_model=d_model)

    fwd = jax.jit(transformer_block_forward,
                  static_argnames=("n_head", "q_k_dim", "v_dim"))
    out = fwd(x, params, n_head=n_head, q_k_dim=q_k_dim, v_dim=v_dim)
    out = jax.block_until_ready(out)

    ref = reference_forward(x, raw, params["rope_cos"], params["rope_sin"],
                            d_model=d_model, n_head=n_head,
                            q_k_dim=q_k_dim, v_dim=v_dim)
    assert out.shape == (B, S, d_model)
    # tolerance loosened slightly vs pure-f32: approx reciprocal (EUP) in
    # softmax / SiLU denominators.
    assert jnp.allclose(out, ref, atol=1e-2, rtol=1e-2), \
        float(jnp.max(jnp.abs(out - ref)))

    print("KERNEL_OK")
</pallas_src>

<mosaic_0001>
module attributes {stable_mosaic.version = 11 : i64} {
  func.func @_qkv_kernel(%arg0: i32, %arg1: memref<8x32xf32, #tpu.memory_space<vmem>>, %arg2: memref<1x32xf32, #tpu.memory_space<vmem>>, %arg3: memref<32x128xf32, #tpu.memory_space<vmem>>, %arg4: memref<8x128xf32, #tpu.memory_space<vmem>>) attributes {dimension_semantics = [#tpu.dimension_semantics<parallel>], iteration_bounds = array<i64: 2>, scalar_prefetch = 0 : i64, scratch_operands = 0 : i64, tpu.core_type = #tpu.core_type<tc>, window_params = [{transform_indices = @transform_0, window_bounds = array<i64: 8, 32>}, {pipeline_mode = #tpu.pipeline_mode<synchronous>, transform_indices = @transform_1, window_bounds = array<i64: 1, 32>}, {pipeline_mode = #tpu.pipeline_mode<synchronous>, transform_indices = @transform_2, window_bounds = array<i64: 32, 128>}, {transform_indices = @transform_3, window_bounds = array<i64: 8, 128>}]} {
    %c0 = arith.constant 0 : index
    %c0_0 = arith.constant 0 : index
    %0 = vector.load %arg1[%c0, %c0_0] : memref<8x32xf32, #tpu.memory_space<vmem>>, vector<8x32xf32>
    %1 = arith.mulf %0, %0 : vector<8x32xf32>
    %cst = arith.constant dense<0.000000e+00> : vector<8xf32>
    %2 = vector.multi_reduction <add>, %1, %cst [1] : vector<8x32xf32> to vector<8xf32>
    %3 = vector.shape_cast %2 : vector<8xf32> to vector<8x1xf32>
    %cst_1 = arith.constant 3.200000e+01 : f32
    %4 = vector.broadcast %cst_1 : f32 to vector<8x1xf32>
    %5 = arith.divf %3, %4 : vector<8x1xf32>
    %cst_2 = arith.constant 9.99999997E-7 : f32
    %6 = vector.broadcast %cst_2 : f32 to vector<8x1xf32>
    %7 = arith.addf %5, %6 : vector<8x1xf32>
    %8 = math.rsqrt %7 : vector<8x1xf32>
    %9 = vector.broadcast %8 : vector<8x1xf32> to vector<8x32xf32>
    %10 = arith.mulf %0, %9 : vector<8x32xf32>
    %c0_3 = arith.constant 0 : index
    %c0_4 = arith.constant 0 : index
    %11 = vector.load %arg2[%c0_3, %c0_4] : memref<1x32xf32, #tpu.memory_space<vmem>>, vector<1x32xf32>
    %12 = vector.broadcast %11 : vector<1x32xf32> to vector<8x32xf32>
    %13 = arith.mulf %10, %12 : vector<8x32xf32>
    %c0_5 = arith.constant 0 : index
    %c0_6 = arith.constant 0 : index
    %14 = vector.load %arg3[%c0_5, %c0_6] : memref<32x128xf32, #tpu.memory_space<vmem>>, vector<32x128xf32>
    %cst_7 = arith.constant dense<0.000000e+00> : vector<8x128xf32>
    %15 = tpu.matmul %13, %14, %cst_7 {dimension_numbers = #tpu.dot_dimension_numbers<[1], [0], [0], [1], [0, 0, 1, 1], [], []>} : vector<8x32xf32>, vector<32x128xf32>, vector<8x128xf32> -> vector<8x128xf32>
    %c0_8 = arith.constant 0 : index
    %c0_9 = arith.constant 0 : index
    %16 = vector.load %arg4[%c0_8, %c0_9] : memref<8x128xf32, #tpu.memory_space<vmem>>, vector<8x128xf32>
    tpu.vector_store %arg4[%c0_8, %c0_9], %15 {strides = array<i32>} : memref<8x128xf32, #tpu.memory_space<vmem>>, vector<8x128xf32>,
    return
  }
  func.func @transform_0(%arg0: i32) -> (i32, i32) {
    %c0_i32 = arith.constant 0 : i32
    %c0_i32_0 = arith.constant 0 : i32
    return %arg0, %c0_i32 : i32, i32
  }
  func.func @transform_1(%arg0: i32) -> (i32, i32) {
    %c0_i32 = arith.constant 0 : i32
    %c0_i32_0 = arith.constant 0 : i32
    %c0_i32_1 = arith.constant 0 : i32
    return %c0_i32, %c0_i32_0 : i32, i32
  }
  func.func @transform_2(%arg0: i32) -> (i32, i32) {
    %c0_i32 = arith.constant 0 : i32
    %c0_i32_0 = arith.constant 0 : i32
    %c0_i32_1 = arith.constant 0 : i32
    return %c0_i32, %c0_i32_0 : i32, i32
  }
  func.func @transform_3(%arg0: i32) -> (i32, i32) {
    %c0_i32 = arith.constant 0 : i32
    %c0_i32_0 = arith.constant 0 : i32
    return %arg0, %c0_i32 : i32, i32
  }
}

module attributes {stable_mosaic.version = 11 : i64} {
  func.func @_attention_kernel(%arg0: i32, %arg1: memref<1x8x128xf32, #tpu.memory_space<vmem>>, %arg2: memref<8x8xf32, #tpu.memory_space<vmem>>, %arg3: memref<8x8xf32, #tpu.memory_space<vmem>>, %arg4: memref<1x8x32xf32, #tpu.memory_space<vmem>>) attributes {dimension_semantics = [#tpu.dimension_semantics<parallel>], iteration_bounds = array<i64: 2>, scalar_prefetch = 0 : i64, scratch_operands = 0 : i64, tpu.core_type = #tpu.core_type<tc>, window_params = [{transform_indices = @transform_0, window_bounds = array<i64: 1, 8, 128>}, {pipeline_mode = #tpu.pipeline_mode<synchronous>, transform_indices = @transform_1, window_bounds = array<i64: 8, 8>}, {pipeline_mode = #tpu.pipeline_mode<synchronous>, transform_indices = @transform_2, window_bounds = array<i64: 8, 8>}, {transform_indices = @transform_3, window_bounds = array<i64: 1, 8, 32>}]} {
    %c0 = arith.constant 0 : index
    %c0_0 = arith.constant 0 : index
    %0 = vector.load %arg2[%c0, %c0_0] : memref<8x8xf32, #tpu.memory_space<vmem>>, vector<8x8xf32>
    %c0_1 = arith.constant 0 : index
    %c0_2 = arith.constant 0 : index
    %1 = vector.load %arg3[%c0_1, %c0_2] : memref<8x8xf32, #tpu.memory_space<vmem>>, vector<8x8xf32>
    %c0_3 = arith.constant 0 : index
    %c0_4 = arith.constant 0 : index
    %c0_5 = arith.constant 0 : index
    %2 = vector.load %arg1[%c0_3, %c0_4, %c0_5] : memref<1x8x128xf32, #tpu.memory_space<vmem>>, vector<1x8x16xf32>
    %3 = vector.shape_cast %2 : vector<1x8x16xf32> to vector<8x16xf32>
    %4 = vector.extract_strided_slice %3 {offsets = [0, 0], sizes = [8, 8], strides = [1, 1]} : vector<8x16xf32> to vector<8x8xf32>
    %5 = vector.extract_strided_slice %3 {offsets = [0, 8], sizes = [8, 8], strides = [1, 1]} : vector<8x16xf32> to vector<8x8xf32>
    %6 = arith.mulf %4, %0 : vector<8x8xf32>
    %7 = arith.mulf %5, %1 : vector<8x8xf32>
    %8 = arith.subf %6, %7 : vector<8x8xf32>
    %9 = arith.mulf %4, %1 : vector<8x8xf32>
    %10 = arith.mulf %5, %0 : vector<8x8xf32>
    %11 = arith.addf %9, %10 : vector<8x8xf32>
    %12 = tpu.concatenate %8, %11 in 1 : vector<8x8xf32>, vector<8x8xf32> -> vector<8x16xf32>
    %c0_6 = arith.constant 0 : index
    %c0_7 = arith.constant 0 : index
    %c32 = arith.constant 32 : index
    %13 = vector.load %arg1[%c0_6, %c0_7, %c32] : memref<1x8x128xf32, #tpu.memory_space<vmem>>, vector<1x8x16xf32>
    %14 = vector.shape_cast %13 : vector<1x8x16xf32> to vector<8x16xf32>
    %15 = vector.extract_strided_slice %14 {offsets = [0, 0], sizes = [8, 8], strides = [1, 1]} : vector<8x16xf32> to vector<8x8xf32>
    %16 = vector.extract_strided_slice %14 {offsets = [0, 8], sizes = [8, 8], strides = [1, 1]} : vector<8x16xf32> to vector<8x8xf32>
    %17 = arith.mulf %15, %0 : vector<8x8xf32>
    %18 = arith.mulf %16, %1 : vector<8x8xf32>
    %19 = arith.subf %17, %18 : vector<8x8xf32>
    %20 = arith.mulf %15, %1 : vector<8x8xf32>
    %21 = arith.mulf %16, %0 : vector<8x8xf32>
    %22 = arith.addf %20, %21 : vector<8x8xf32>
    %23 = tpu.concatenate %19, %22 in 1 : vector<8x8xf32>, vector<8x8xf32> -> vector<8x16xf32>
    %c0_8 = arith.constant 0 : index
    %c0_9 = arith.constant 0 : index
    %c64 = arith.constant 64 : index
    %24 = vector.load %arg1[%c0_8, %c0_9, %c64] : memref<1x8x128xf32, #tpu.memory_space<vmem>>, vector<1x8x16xf32>
    %25 = vector.shape_cast %24 : vector<1x8x16xf32> to vector<8x16xf32>
    %cst = arith.constant dense<0.000000e+00> : vector<8x8xf32>
    %26 = tpu.matmul %12, %23, %cst {dimension_numbers = #tpu.dot_dimension_numbers<[1], [1], [0], [0], [0, 0, 1, 0], [], []>} : vector<8x16xf32>, vector<8x16xf32>, vector<8x8xf32> -> vector<8x8xf32>
    %cst_10 = arith.constant dense<0xFF800000> : vector<8xf32>
    %27 = vector.multi_reduction <maximumf>, %26, %cst_10 [1] : vector<8x8xf32> to vector<8xf32>
    %28 = vector.shape_cast %27 : vector<8xf32> to vector<8x1xf32>
    %29 = vector.broadcast %28 : vector<8x1xf32> to vector<8x8xf32>
    %30 = arith.subf %26, %29 : vector<8x8xf32>
    %31 = math.exp %30 : vector<8x8xf32>
    %cst_11 = arith.constant dense<0.000000e+00> : vector<8xf32>
    %32 = vector.multi_reduction <add>, %31, %cst_11 [1] : vector<8x8xf32> to vector<8xf32>
    %33 = vector.shape_cast %32 : vector<8xf32> to vector<8x1xf32>
    %34 = tpu.reciprocal %33 {approx = true} : vector<8x1xf32> -> vector<8x1xf32>
    %35 = vector.broadcast %34 : vector<8x1xf32> to vector<8x8xf32>
    %36 = arith.mulf %31, %35 : vector<8x8xf32>
    %cst_12 = arith.constant dense<0.000000e+00> : vector<8x16xf32>
    %37 = tpu.matmul %36, %25, %cst_12 {dimension_numbers = #tpu.dot_dimension_numbers<[1], [0], [0], [1], [0, 0, 1, 1], [], []>} : vector<8x8xf32>, vector<8x16xf32>, vector<8x16xf32> -> vector<8x16xf32>
    %c0_13 = arith.constant 0 : index
    %c0_14 = arith.constant 0 : index
    %c0_15 = arith.constant 0 : index
    %38 = vector.load %arg4[%c0_13, %c0_14, %c0_15] : memref<1x8x32xf32, #tpu.memory_space<vmem>>, vector<1x8x16xf32>
    %39 = vector.shape_cast %38 : vector<1x8x16xf32> to vector<8x16xf32>
    %40 = vector.shape_cast %37 : vector<8x16xf32> to vector<1x8x16xf32>
    tpu.vector_store %arg4[%c0_13, %c0_14, %c0_15], %40 {strides = array<i32>} : memref<1x8x32xf32, #tpu.memory_space<vmem>>, vector<1x8x16xf32>,
    %c0_16 = arith.constant 0 : index
    %c0_17 = arith.constant 0 : index
    %c16 = arith.constant 16 : index
    %41 = vector.load %arg1[%c0_16, %c0_17, %c16] : memref<1x8x128xf32, #tpu.memory_space<vmem>>, vector<1x8x16xf32>
    %42 = vector.shape_cast %41 : vector<1x8x16xf32> to vector<8x16xf32>
    %43 = vector.extract_strided_slice %42 {offsets = [0, 0], sizes = [8, 8], strides = [1, 1]} : vector<8x16xf32> to vector<8x8xf32>
    %44 = vector.extract_strided_slice %42 {offsets = [0, 8], sizes = [8, 8], strides = [1, 1]} : vector<8x16xf32> to vector<8x8xf32>
    %45 = arith.mulf %43, %0 : vector<8x8xf32>
    %46 = arith.mulf %44, %1 : vector<8x8xf32>
    %47 = arith.subf %45, %46 : vector<8x8xf32>
    %48 = arith.mulf %43, %1 : vector<8x8xf32>
    %49 = arith.mulf %44, %0 : vector<8x8xf32>
    %50 = arith.addf %48, %49 : vector<8x8xf32>
    %51 = tpu.concatenate %47, %50 in 1 : vector<8x8xf32>, vector<8x8xf32> -> vector<8x16xf32>
    %c0_18 = arith.constant 0 : index
    %c0_19 = arith.constant 0 : index
    %c48 = arith.constant 48 : index
    %52 = vector.load %arg1[%c0_18, %c0_19, %c48] : memref<1x8x128xf32, #tpu.memory_space<vmem>>, vector<1x8x16xf32>
    %53 = vector.shape_cast %52 : vector<1x8x16xf32> to vector<8x16xf32>
    %54 = vector.extract_strided_slice %53 {offsets = [0, 0], sizes = [8, 8], strides = [1, 1]} : vector<8x16xf32> to vector<8x8xf32>
    %55 = vector.extract_strided_slice %53 {offsets = [0, 8], sizes = [8, 8], strides = [1, 1]} : vector<8x16xf32> to vector<8x8xf32>
    %56 = arith.mulf %54, %0 : vector<8x8xf32>
    %57 = arith.mulf %55, %1 : vector<8x8xf32>
    %58 = arith.subf %56, %57 : vector<8x8xf32>
    %59 = arith.mulf %54, %1 : vector<8x8xf32>
    %60 = arith.mulf %55, %0 : vector<8x8xf32>
    %61 = arith.addf %59, %60 : vector<8x8xf32>
    %62 = tpu.concatenate %58, %61 in 1 : vector<8x8xf32>, vector<8x8xf32> -> vector<8x16xf32>
    %c0_20 = arith.constant 0 : index
    %c0_21 = arith.constant 0 : index
    %c80 = arith.constant 80 : index
    %63 = vector.load %arg1[%c0_20, %c0_21, %c80] : memref<1x8x128xf32, #tpu.memory_space<vmem>>, vector<1x8x16xf32>
    %64 = vector.shape_cast %63 : vector<1x8x16xf32> to vector<8x16xf32>
    %cst_22 = arith.constant dense<0.000000e+00> : vector<8x8xf32>
    %65 = tpu.matmul %51, %62, %cst_22 {dimension_numbers = #tpu.dot_dimension_numbers<[1], [1], [0], [0], [0, 0, 1, 0], [], []>} : vector<8x16xf32>, vector<8x16xf32>, vector<8x8xf32> -> vector<8x8xf32>
    %cst_23 = arith.constant dense<0xFF800000> : vector<8xf32>
    %66 = vector.multi_reduction <maximumf>, %65, %cst_23 [1] : vector<8x8xf32> to vector<8xf32>
    %67 = vector.shape_cast %66 : vector<8xf32> to vector<8x1xf32>
    %68 = vector.broadcast %67 : vector<8x1xf32> to vector<8x8xf32>
    %69 = arith.subf %65, %68 : vector<8x8xf32>
    %70 = math.exp %69 : vector<8x8xf32>
    %cst_24 = arith.constant dense<0.000000e+00> : vector<8xf32>
    %71 = vector.multi_reduction <add>, %70, %cst_24 [1] : vector<8x8xf32> to vector<8xf32>
    %72 = vector.shape_cast %71 : vector<8xf32> to vector<8x1xf32>
    %73 = tpu.reciprocal %72 {approx = true} : vector<8x1xf32> -> vector<8x1xf32>
    %74 = vector.broadcast %73 : vector<8x1xf32> to vector<8x8xf32>
    %75 = arith.mulf %70, %74 : vector<8x8xf32>
    %cst_25 = arith.constant dense<0.000000e+00> : vector<8x16xf32>
    %76 = tpu.matmul %75, %64, %cst_25 {dimension_numbers = #tpu.dot_dimension_numbers<[1], [0], [0], [1], [0, 0, 1, 1], [], []>} : vector<8x8xf32>, vector<8x16xf32>, vector<8x16xf32> -> vector<8x16xf32>
    %c0_26 = arith.constant 0 : index
    %c0_27 = arith.constant 0 : index
    %c16_28 = arith.constant 16 : index
    %77 = vector.load %arg4[%c0_26, %c0_27, %c16_28] : memref<1x8x32xf32, #tpu.memory_space<vmem>>, vector<1x8x16xf32>
    %78 = vector.shape_cast %77 : vector<1x8x16xf32> to vector<8x16xf32>
    %79 = vector.shape_cast %76 : vector<8x16xf32> to vector<1x8x16xf32>
    tpu.vector_store %arg4[%c0_26, %c0_27, %c16_28], %79 {strides = array<i32>} : memref<1x8x32xf32, #tpu.memory_space<vmem>>, vector<1x8x16xf32>,
    return
  }
  func.func @transform_0(%arg0: i32) -> (i32, i32, i32) {
    %c0_i32 = arith.constant 0 : i32
    %c0_i32_0 = arith.constant 0 : i32
    %c0_i32_1 = arith.constant 0 : i32
    return %arg0, %c0_i32, %c0_i32_0 : i32, i32, i32
  }
  func.func @transform_1(%arg0: i32) -> (i32, i32) {
    %c0_i32 = arith.constant 0 : i32
    %c0_i32_0 = arith.constant 0 : i32
    %c0_i32_1 = arith.constant 0 : i32
    return %c0_i32, %c0_i32_0 : i32, i32
  }
  func.func @transform_2(%arg0: i32) -> (i32, i32) {
    %c0_i32 = arith.constant 0 : i32
    %c0_i32_0 = arith.constant 0 : i32
    %c0_i32_1 = arith.constant 0 : i32
    return %c0_i32, %c0_i32_0 : i32, i32
  }
  func.func @transform_3(%arg0: i32) -> (i32, i32, i32) {
    %c0_i32 = arith.constant 0 : i32
    %c0_i32_0 = arith.constant 0 : i32
    %c0_i32_1 = arith.constant 0 : i32
    return %arg0, %c0_i32, %c0_i32_0 : i32, i32, i32
  }
}

module attributes {stable_mosaic.version = 11 : i64} {
  func.func @_out_ffn_kernel(%arg0: i32, %arg1: memref<8x32xf32, #tpu.memory_space<vmem>>, %arg2: memref<8x32xf32, #tpu.memory_space<vmem>>, %arg3: memref<32x32xf32, #tpu.memory_space<vmem>>, %arg4: memref<1x32xf32, #tpu.memory_space<vmem>>, %arg5: memref<32x64xf32, #tpu.memory_space<vmem>>, %arg6: memref<1x64xf32, #tpu.memory_space<vmem>>, %arg7: memref<32x64xf32, #tpu.memory_space<vmem>>, %arg8: memref<1x64xf32, #tpu.memory_space<vmem>>, %arg9: memref<64x32xf32, #tpu.memory_space<vmem>>, %arg10: memref<1x32xf32, #tpu.memory_space<vmem>>, %arg11: memref<8x32xf32, #tpu.memory_space<vmem>>) attributes {dimension_semantics = [#tpu.dimension_semantics<parallel>], iteration_bounds = array<i64: 2>, scalar_prefetch = 0 : i64, scratch_operands = 0 : i64, tpu.core_type = #tpu.core_type<tc>, window_params = [{transform_indices = @transform_0, window_bounds = array<i64: 8, 32>}, {transform_indices = @transform_1, window_bounds = array<i64: 8, 32>}, {pipeline_mode = #tpu.pipeline_mode<synchronous>, transform_indices = @transform_2, window_bounds = array<i64: 32, 32>}, {pipeline_mode = #tpu.pipeline_mode<synchronous>, transform_indices = @transform_3, window_bounds = array<i64: 1, 32>}, {pipeline_mode = #tpu.pipeline_mode<synchronous>, transform_indices = @transform_4, window_bounds = array<i64: 32, 64>}, {pipeline_mode = #tpu.pipeline_mode<synchronous>, transform_indices = @transform_5, window_bounds = array<i64: 1, 64>}, {pipeline_mode = #tpu.pipeline_mode<synchronous>, transform_indices = @transform_6, window_bounds = array<i64: 32, 64>}, {pipeline_mode = #tpu.pipeline_mode<synchronous>, transform_indices = @transform_7, window_bounds = array<i64: 1, 64>}, {pipeline_mode = #tpu.pipeline_mode<synchronous>, transform_indices = @transform_8, window_bounds = array<i64: 64, 32>}, {pipeline_mode = #tpu.pipeline_mode<synchronous>, transform_indices = @transform_9, window_bounds = array<i64: 1, 32>}, {transform_indices = @transform_10, window_bounds = array<i64: 8, 32>}]} {
    %c0 = arith.constant 0 : index
    %c0_0 = arith.constant 0 : index
    %0 = vector.load %arg1[%c0, %c0_0] : memref<8x32xf32, #tpu.memory_space<vmem>>, vector<8x32xf32>
    %c0_1 = arith.constant 0 : index
    %c0_2 = arith.constant 0 : index
    %1 = vector.load %arg2[%c0_1, %c0_2] : memref<8x32xf32, #tpu.memory_space<vmem>>, vector<8x32xf32>
    %c0_3 = arith.constant 0 : index
    %c0_4 = arith.constant 0 : index
    %2 = vector.load %arg3[%c0_3, %c0_4] : memref<32x32xf32, #tpu.memory_space<vmem>>, vector<32x32xf32>
    %cst = arith.constant dense<0.000000e+00> : vector<8x32xf32>
    %3 = tpu.matmul %1, %2, %cst {dimension_numbers = #tpu.dot_dimension_numbers<[1], [0], [0], [1], [0, 0, 1, 1], [], []>} : vector<8x32xf32>, vector<32x32xf32>, vector<8x32xf32> -> vector<8x32xf32>
    %4 = arith.addf %0, %3 : vector<8x32xf32>
    %5 = arith.mulf %4, %4 : vector<8x32xf32>
    %cst_5 = arith.constant dense<0.000000e+00> : vector<8xf32>
    %6 = vector.multi_reduction <add>, %5, %cst_5 [1] : vector<8x32xf32> to vector<8xf32>
    %7 = vector.shape_cast %6 : vector<8xf32> to vector<8x1xf32>
    %cst_6 = arith.constant 3.200000e+01 : f32
    %8 = vector.broadcast %cst_6 : f32 to vector<8x1xf32>
    %9 = arith.divf %7, %8 : vector<8x1xf32>
    %cst_7 = arith.constant 9.99999997E-7 : f32
    %10 = vector.broadcast %cst_7 : f32 to vector<8x1xf32>
    %11 = arith.addf %9, %10 : vector<8x1xf32>
    %12 = math.rsqrt %11 : vector<8x1xf32>
    %13 = vector.broadcast %12 : vector<8x1xf32> to vector<8x32xf32>
    %14 = arith.mulf %4, %13 : vector<8x32xf32>
    %c0_8 = arith.constant 0 : index
    %c0_9 = arith.constant 0 : index
    %15 = vector.load %arg4[%c0_8, %c0_9] : memref<1x32xf32, #tpu.memory_space<vmem>>, vector<1x32xf32>
    %16 = vector.broadcast %15 : vector<1x32xf32> to vector<8x32xf32>
    %17 = arith.mulf %14, %16 : vector<8x32xf32>
    %c0_10 = arith.constant 0 : index
    %c0_11 = arith.constant 0 : index
    %18 = vector.load %arg5[%c0_10, %c0_11] : memref<32x64xf32, #tpu.memory_space<vmem>>, vector<32x64xf32>
    %cst_12 = arith.constant dense<0.000000e+00> : vector<8x64xf32>
    %19 = tpu.matmul %17, %18, %cst_12 {dimension_numbers = #tpu.dot_dimension_numbers<[1], [0], [0], [1], [0, 0, 1, 1], [], []>} : vector<8x32xf32>, vector<32x64xf32>, vector<8x64xf32> -> vector<8x64xf32>
    %c0_13 = arith.constant 0 : index
    %c0_14 = arith.constant 0 : index
    %20 = vector.load %arg6[%c0_13, %c0_14] : memref<1x64xf32, #tpu.memory_space<vmem>>, vector<1x64xf32>
    %21 = vector.broadcast %20 : vector<1x64xf32> to vector<8x64xf32>
    %22 = arith.addf %19, %21 : vector<8x64xf32>
    %c0_15 = arith.constant 0 : index
    %c0_16 = arith.constant 0 : index
    %23 = vector.load %arg7[%c0_15, %c0_16] : memref<32x64xf32, #tpu.memory_space<vmem>>, vector<32x64xf32>
    %cst_17 = arith.constant dense<0.000000e+00> : vector<8x64xf32>
    %24 = tpu.matmul %17, %23, %cst_17 {dimension_numbers = #tpu.dot_dimension_numbers<[1], [0], [0], [1], [0, 0, 1, 1], [], []>} : vector<8x32xf32>, vector<32x64xf32>, vector<8x64xf32> -> vector<8x64xf32>
    %c0_18 = arith.constant 0 : index
    %c0_19 = arith.constant 0 : index
    %25 = vector.load %arg8[%c0_18, %c0_19] : memref<1x64xf32, #tpu.memory_space<vmem>>, vector<1x64xf32>
    %26 = vector.broadcast %25 : vector<1x64xf32> to vector<8x64xf32>
    %27 = arith.addf %24, %26 : vector<8x64xf32>
    %cst_20 = arith.constant 0.000000e+00 : f32
    %28 = vector.broadcast %cst_20 : f32 to vector<8x64xf32>
    %29 = arith.subf %28, %22 : vector<8x64xf32>
    %30 = math.exp %29 : vector<8x64xf32>
    %cst_21 = arith.constant 1.000000e+00 : f32
    %31 = vector.broadcast %cst_21 : f32 to vector<8x64xf32>
    %32 = arith.addf %31, %30 : vector<8x64xf32>
    %33 = tpu.reciprocal %32 {approx = true} : vector<8x64xf32> -> vector<8x64xf32>
    %34 = arith.mulf %22, %33 : vector<8x64xf32>
    %35 = arith.mulf %34, %27 : vector<8x64xf32>
    %c0_22 = arith.constant 0 : index
    %c0_23 = arith.constant 0 : index
    %36 = vector.load %arg9[%c0_22, %c0_23] : memref<64x32xf32, #tpu.memory_space<vmem>>, vector<64x32xf32>
    %cst_24 = arith.constant dense<0.000000e+00> : vector<8x32xf32>
    %37 = tpu.matmul %35, %36, %cst_24 {dimension_numbers = #tpu.dot_dimension_numbers<[1], [0], [0], [1], [0, 0, 1, 1], [], []>} : vector<8x64xf32>, vector<64x32xf32>, vector<8x32xf32> -> vector<8x32xf32>
    %c0_25 = arith.constant 0 : index
    %c0_26 = arith.constant 0 : index
    %38 = vector.load %arg10[%c0_25, %c0_26] : memref<1x32xf32, #tpu.memory_space<vmem>>, vector<1x32xf32>
    %39 = vector.broadcast %38 : vector<1x32xf32> to vector<8x32xf32>
    %40 = arith.addf %37, %39 : vector<8x32xf32>
    %41 = arith.addf %40, %4 : vector<8x32xf32>
    %c0_27 = arith.constant 0 : index
    %c0_28 = arith.constant 0 : index
    %42 = vector.load %arg11[%c0_27, %c0_28] : memref<8x32xf32, #tpu.memory_space<vmem>>, vector<8x32xf32>
    tpu.vector_store %arg11[%c0_27, %c0_28], %41 {strides = array<i32>} : memref<8x32xf32, #tpu.memory_space<vmem>>, vector<8x32xf32>,
    return
  }
  func.func @transform_0(%arg0: i32) -> (i32, i32) {
    %c0_i32 = arith.constant 0 : i32
    %c0_i32_0 = arith.constant 0 : i32
    return %arg0, %c0_i32 : i32, i32
  }
  func.func @transform_1(%arg0: i32) -> (i32, i32) {
    %c0_i32 = arith.constant 0 : i32
    %c0_i32_0 = arith.constant 0 : i32
    return %arg0, %c0_i32 : i32, i32
  }
  func.func @transform_2(%arg0: i32) -> (i32, i32) {
    %c0_i32 = arith.constant 0 : i32
    %c0_i32_0 = arith.constant 0 : i32
    %c0_i32_1 = arith.constant 0 : i32
    return %c0_i32, %c0_i32_0 : i32, i32
  }
  func.func @transform_3(%arg0: i32) -> (i32, i32) {
    %c0_i32 = arith.constant 0 : i32
    %c0_i32_0 = arith.constant 0 : i32
    %c0_i32_1 = arith.constant 0 : i32
    return %c0_i32, %c0_i32_0 : i32, i32
  }
  func.func @transform_4(%arg0: i32) -> (i32, i32) {
    %c0_i32 = arith.constant 0 : i32
    %c0_i32_0 = arith.constant 0 : i32
    %c0_i32_1 = arith.constant 0 : i32
    return %c0_i32, %c0_i32_0 : i32, i32
  }
  func.func @transform_5(%arg0: i32) -> (i32, i32) {
    %c0_i32 = arith.constant 0 : i32
    %c0_i32_0 = arith.constant 0 : i32
    %c0_i32_1 = arith.constant 0 : i32
    return %c0_i32, %c0_i32_0 : i32, i32
  }
  func.func @transform_6(%arg0: i32) -> (i32, i32) {
    %c0_i32 = arith.constant 0 : i32
    %c0_i32_0 = arith.constant 0 : i32
    %c0_i32_1 = arith.constant 0 : i32
    return %c0_i32, %c0_i32_0 : i32, i32
  }
  func.func @transform_7(%arg0: i32) -> (i32, i32) {
    %c0_i32 = arith.constant 0 : i32
    %c0_i32_0 = arith.constant 0 : i32
    %c0_i32_1 = arith.constant 0 : i32
    return %c0_i32, %c0_i32_0 : i32, i32
  }
  func.func @transform_8(%arg0: i32) -> (i32, i32) {
    %c0_i32 = arith.constant 0 : i32
    %c0_i32_0 = arith.constant 0 : i32
    %c0_i32_1 = arith.constant 0 : i32
    return %c0_i32, %c0_i32_0 : i32, i32
  }
  func.func @transform_9(%arg0: i32) -> (i32, i32) {
    %c0_i32 = arith.constant 0 : i32
    %c0_i32_0 = arith.constant 0 : i32
    %c0_i32_1 = arith.constant 0 : i32
    return %c0_i32, %c0_i32_0 : i32, i32
  }
  func.func @transform_10(%arg0: i32) -> (i32, i32) {
    %c0_i32 = arith.constant 0 : i32
    %c0_i32_0 = arith.constant 0 : i32
    return %arg0, %c0_i32 : i32, i32
  }
}

</mosaic_0001>

<bundles_post_ra>
// kernel: transformer_block_forward.3
= control target key start
LH: loop header
LB: loop body
LE: loop exit
PB: predicated region body
PF: predicated region fallthrough
CT: control target
= control target key end

     0   :  { %s393_s12 = smov 0   ;;  %s434_s0 = inlined_call_operand.vmem [shape: f32[16,32], index: 0, kind: input, shape index: {}]   ;;  %s435_s1 = inlined_call_operand.vmem [shape: f32[1,32], index: 1, kind: input, shape index: {}]   ;;  %s436_s2 = inlined_call_operand.vmem [shape: f32[32,128], index: 2, kind: input, shape index: {}]   ;;  %s437_s3 = inlined_call_operand.vmem [shape: f32[16,128], index: 3, kind: output, shape index: {}]  }
   0x1 LB: > { %s316_s13 = sadd.s32 4294967295, %s368_s12   ;;  %p320_p0 = scmp.ge.s32.totalorder %s368_s12, 1  ;;  %s368_s12 = sphi %s393_s12, %s13_s12  }
   0x2   : > { %p136_p1 = scmp.lt.s32.totalorder %s368_s12, 3 }
   0x4   : > { %p137_p2 = pnand %p320_p0, %p136_p1 }
   0x5   : > { %p158_p3 = scmp.lt.s32.totalorder (!%p137_p2), %s316_s13, 1  ;;  %vm168_vm0 = vcmask (!%p137_p2), 261120   ;;  %v185_v3 = vld [vmem:[%s436_s2] sm:$0xff] (!%p137_p2)  ;;  %v186_v4 = vld [vmem:[%s436_s2 + $0x8] sm:$0xff] (!%p137_p2)  ;;  %v187_v5 = vld [vmem:[%s436_s2 + $0x10] sm:$0xff] (!%p137_p2)  ;;  %v370_v6 = vmov (!%p137_p2), 0.0|0.0  }
   0x6   : > { %140 = sbr.rel (%p137_p2) target bundleno = 394 (0x18a), region = 32  ;;  %343 = vmatprep.subr.bf16.mxu0 (!%p137_p2), %v370_v6  ;;  %v344_v7 = vpack.c.bf16 (!%p137_p2), %v186_v4, %v185_v3  ;;  %v188_v8 = vld [vmem:[%s436_s2 + $0x18] sm:$0xff] (!%p137_p2)  ;;  %vm371_vm1 = vmmov (!%p137_p2), 0   ;;  %v372_v9 = vmov (!%p137_p2), 0.0   ;;  %v323_v15 = vld [vmem:[%s435_s1] ss:$0 sm:$0xff] (!%p137_p2) }
   0x7   : > { %340 = vmatprep.mubr.msk.f32.mxu0 (!%p137_p2), %vm371_vm1, %v372_v9  ;;  %v347_v10 = vpack.c.bf16 (!%p137_p2), %v188_v8, %v187_v5 }
   0x8   : > { %345 = vmatpush3.bf16.msra.mxu0 (!%p137_p2), %v344_v7 }
   0x9   : > { %346 = vmatprep.subr.bf16.mxu0 (!%p137_p2), %v370_v6 }
   0xc   : > { %348 = vmatpush3.bf16.msra.mxu0 (!%p137_p2), %v347_v10 }
   0xd   : > { %s439_s13 = smov (!%p158_p3, %s316_s13), 1 }
   0xe   : > { %s321_s14 = sshll.u32 %s439_s13, 3 }
   0xf   : > { %s161_s17 = scalar_lea.vmem %s434_s0, %s321_s14  ;;  %s165_s30 = scalar_lea.vmem %s437_s3, %s321_s14 }
  0x10   : > { %v166_v0 = vld [vmem:[%s161_s17] sm:$0xff] }
  0x11   : > { %v167_v1 = vmul.f32 %v166_v0, %v166_v0 }
  0x13   : > { %v169_v2 = vsel %vm168_vm0, %v167_v1, 0.0 }
  0x14   : > { %170 = vadd.xlane.f32.xlu0 %v169_v2 }
  0xa1   : > { %v171_v11 = vpop.xlane.xlu0 %170 }
  0xa2   : > { %v173_v12 = vmul.f32 0.03125, %v171_v11 }
  0xa4   : > { %v174_v13 = vadd.f32 1e-06, %v173_v12 }
  0xa6   : > { %360 = vrsqrt.f32 %v174_v13 }
  0xb0   : > { %v361_v14 = vpop.eup %360 }
  0xb1   : > { %v176_v16 = vmul.f32 %v361_v14, %v166_v0 }
  0xb3   : > { %v184_v17 = vmul.f32 %v323_v15, %v176_v16 }
  0xb5   : > { %341 = vmatmul.mubr.msk.f32.vlgmr.msra.gmra.mrb[0].mxu0 %vm168_vm0, %v184_v17 }
 0x188   : > { %v258_v18 = vpop.f32.mrb[0].mxu0 }
 0x189   : > { %262 = vst [vmem:[%s165_s30] sm:$0xff] %v258_v18  ;;  %v342_v19 = vpop.f32.mrb[1].mxu0 }
 0x18a PF: > { %s13_s12 = sadd.s32 1, %s368_s12  }
 0x18b   : > { %p10_p4 = scmp.ge.s32.totalorder %s13_s12, 4  }
 0x18d   :  { %12 = sbr.rel (!%p10_p4) target bundleno = 1 (0x1), region = 62 }

// kernel: transformer_block_forward.4
= control target key start
LH: loop header
LB: loop body
LE: loop exit
PB: predicated region body
PF: predicated region fallthrough
CT: control target
= control target key end

     0   :  { %s811_s12 = smov 0   ;;  %s926_s0 = inlined_call_operand.vmem [shape: f32[2,8,128], index: 0, kind: input, shape index: {}]   ;;  %s927_s1 = inlined_call_operand.vmem [shape: f32[8,8], index: 1, kind: input, shape index: {}]   ;;  %s928_s2 = inlined_call_operand.vmem [shape: f32[8,8], index: 2, kind: input, shape index: {}]   ;;  %s929_s3 = inlined_call_operand.vmem [shape: f32[2,8,32], index: 3, kind: output, shape index: {}]  }
   0x1 LB: > { %s692_s13 = sadd.s32 4294967295, %s773_s12   ;;  %p696_p0 = scmp.ge.s32.totalorder %s773_s12, 1  ;;  %s773_s12 = sphi %s811_s12, %s13_s12  }
   0x2   : > { %p136_p1 = scmp.lt.s32.totalorder %s773_s12, 3 }
   0x4   : > { %p137_p2 = pnand %p696_p0, %p136_p1 }
   0x5   : > { %v822_v0 = vld [vmem:[%s928_s2] sm:$0xff] (!%p137_p2)  ;;  %s775_s18 = smov (!%p137_p2), 40   ;;  %s776_s19 = smov (!%p137_p2), 8   ;;  %v779_v10 = vmov (!%p137_p2), 0.0   ;;  %vm780_vm0 = vmmov (!%p137_p2), 0   ;;  %vm195_vm1 = vcmask (!%p137_p2), 64512  }
   0x6   : > { %140 = sbr.rel (%p137_p2) target bundleno = 1748 (0x6d4), region = 32  ;;  %v827_v1 = vld [vmem:[%s927_s1] sm:$0xff] (!%p137_p2)  ;;  %201 = vrot.lane.b32.xlu0 (!%p137_p2), %v822_v0, %s775_s18  ;;  %s777_s20 = smov (!%p137_p2), 32   ;;  %715 = vmatprep.subr.mxu0 (!%p137_p2), %v779_v10  ;;  %vm232_vm2 = vcmask (!%p137_p2), 130048   ;;  %vm637_vm3 = vcmask (!%p137_p2), 261248  }
   0x7   : > { %182 = vrot.lane.b32.xlu1 (!%p137_p2), %v827_v1, %s776_s19  ;;  %p158_p3 = scmp.lt.s32.totalorder (!%p137_p2), %s692_s13, 1  ;;  %s778_s25 = smov (!%p137_p2), 120   ;;  %720 = vmatprep.subr.mxu1 (!%p137_p2), %v779_v10 }
   0x8   : > { %717 = vmatprep.mubr.msk.f32.mxu0 (!%p137_p2), %vm780_vm0, %v779_v10  ;;  %722 = vmatprep.mubr.msk.f32.mxu1 (!%p137_p2), %vm780_vm0, %v779_v10  ;;  %s781_s26 = smov (!%p137_p2), 96   ;;  %s782_s27 = smov (!%p137_p2), 104  }
   0x9   : > { %s783_s28 = smov (!%p137_p2), 56   ;;  %s784_s29 = smov (!%p137_p2), 24  }
   0xa   : > { %214 = vrot.lane.b32.xlu0 (!%p137_p2), %v827_v1, %s775_s18  ;;  %s785_s30 = smov (!%p137_p2), 48   ;;  %s786_s4 = smov (!%p137_p2), 16  }
   0xb   : > { %197 = vrot.lane.b32.xlu1 (!%p137_p2), %v827_v1, %s777_s20  ;;  %s787_s5 = smov (!%p137_p2), 64   ;;  %s788_s6 = smov (!%p137_p2), 80  }
   0xc   : > { %s789_s7 = smov (!%p137_p2), 88   ;;  %s790_s8 = smov (!%p137_p2), 112  }
   0xd   : > { %s931_s13 = smov (!%p158_p3, %s692_s13), 1 }
   0xe   : > { %210 = vrot.lane.b32.xlu0 %v822_v0, %s777_s20  ;;  %s697_s21 = sshll.u32 %s931_s13, 3 }
   0xf   : > { %s161_s24 = scalar_lea.vmem %s926_s0, %s697_s21  ;;  %s165_s11 = scalar_lea.vmem %s929_s3, %s697_s21 }
  0x10   : > { %v843_v2 = vld [vmem:[%s161_s24] sm:$0xff] }
  0x11   : > { %v180_v20 = vmul.f32 %v843_v2, %v822_v0  ;;  %v169_v24 = vmul.f32 %v843_v2, %v827_v1 }
  0x78   : > { %v202_v3 = vpop.permute.xlu0 %201 }
  0x79   : > { %v204_v4 = vmul.f32 %v202_v3, %v843_v2  ;;  %v183_v6 = vpop.permute.xlu1 %182 }
  0x7a   : > { %v185_v8 = vmul.f32 %v183_v6, %v843_v2 }
  0x7b   : > { %206 = vrot.lane.b32.xlu1 %v204_v4, %s778_s25 }
  0x7c   : > { %v215_v5 = vpop.permute.xlu0 %214 }
  0x7d   : > { %v217_v7 = vmul.f32 %v215_v5, %v843_v2  ;;  %v198_v9 = vpop.permute.xlu1 %197 }
  0x7e   : > { %v200_v11 = vmul.f32 %v198_v9, %v843_v2 }
  0x7f   : > { %219 = vrot.lane.b32.xlu0 %v217_v7, %s778_s25  ;;  %171 = vrot.lane.b32.xlu1 %v822_v0, %s776_s19 }
  0x80   : > { %v211_v12 = vpop.permute.xlu0 %210 }
  0x81   : > { %v213_v15 = vmul.f32 %v211_v12, %v843_v2 }
  0x83   : > { %187 = vrot.lane.b32.xlu0 %v185_v8, %s778_s25 }
  0xed   : > { %v207_v13 = vpop.permute.xlu1 %206 }
  0xee   : > { %v209_v14 = vsub.f32 %v200_v11, %v207_v13 }
  0xf0   : > { %224 = vrot.lane.b32.xlu1 %v209_v14, %s781_s26 }
  0xf1   : > { %v220_v16 = vpop.permute.xlu0 %219  ;;  %v172_v17 = vpop.permute.xlu1 %171 }
  0xf2   : > { %v222_v18 = vadd.f32 %v220_v16, %v213_v15  ;;  %v174_v19 = vmul.f32 %v172_v17, %v843_v2 }
  0xf4   : > { %228 = vrot.lane.b32.xlu0 %v222_v18, %s782_s27  ;;  %176 = vrot.lane.b32.xlu1 %v174_v19, %s778_s25 }
  0xf5   : > { %v188_v21 = vpop.permute.xlu0 %187 }
  0xf6   : > { %v190_v22 = vadd.f32 %v188_v21, %v180_v20 }
  0xf8   : > { %192 = vrot.lane.b32.xlu0 %v190_v22, %s776_s19  ;;  %438 = vrot.lane.b32.xlu1 %v822_v0, %s783_s28 }
  0xfc   : > { %451 = vrot.lane.b32.xlu0 %v827_v1, %s783_s28  ;;  %403 = vrot.lane.b32.xlu1 %v822_v0, %s784_s29 }
 0x100   : > { %416 = vrot.lane.b32.xlu0 %v827_v1, %s784_s29 }
 0x104   : > { %434 = vrot.lane.b32.xlu0 %v827_v1, %s785_s30 }
 0x108   : > { %447 = vrot.lane.b32.xlu0 %v822_v0, %s785_s30 }
 0x162   : > { %v225_v23 = vpop.permute.xlu1 %224 }
 0x166   : > { %v229_v25 = vpop.permute.xlu0 %228  ;;  %v177_v26 = vpop.permute.xlu1 %176 }
 0x167   : > { %v179_v27 = vsub.f32 %v169_v24, %v177_v26  ;;  %v231_v28 = vsel %vm195_vm1, %v225_v23, %v229_v25 }
 0x168   : > { %716 = vmatpush3.xpose.msk.msra.mxu0 %vm232_vm2, %v231_v28 }
 0x169   : > { %730 = vmatprep.subr.mxu0 %v779_v10 }
 0x16a   : > { %v193_v29 = vpop.permute.xlu0 %192  ;;  %v439_v31 = vpop.permute.xlu1 %438 }
 0x16b   : > { %v196_v30 = vsel %vm195_vm1, %v179_v27, %v193_v29  ;;  %v441_v32 = vmul.f32 %v439_v31, %v843_v2 }
 0x16c   : > { %718 = vmatmul.mubr.msk.f32.vlgmr.msra.gmra.mrb[0].mxu0 %vm232_vm2, %v196_v30 }
 0x16d   : > { %732 = vmatprep.mubr.msk.f32.mxu0 %vm780_vm0, %v779_v10  ;;  %443 = vrot.lane.b32.xlu0 %v441_v32, %s778_s25 }
 0x16e   : > { %v452_v33 = vpop.permute.xlu0 %451  ;;  %v404_v35 = vpop.permute.xlu1 %403 }
 0x16f   : > { %v454_v34 = vmul.f32 %v452_v33, %v843_v2  ;;  %v406_v36 = vmul.f32 %v404_v35, %v843_v2 }
 0x171   : > { %456 = vrot.lane.b32.xlu0 %v454_v34, %s778_s25 }
 0x172   : > { %v417_v37 = vpop.permute.xlu0 %416 }
 0x173   : > { %v419_v38 = vmul.f32 %v417_v37, %v843_v2 }
 0x175   : > { %399 = vrot.lane.b32.xlu0 %v827_v1, %s786_s4 }
 0x176   : > { %v435_v42 = vpop.permute.xlu0 %434 }
 0x177   : > { %v437_v44 = vmul.f32 %v435_v42, %v843_v2 }
 0x179   : > { %412 = vrot.lane.b32.xlu0 %v822_v0, %s786_s4 }
 0x17a   : > { %v448_v43 = vpop.permute.xlu0 %447 }
 0x17b   : > { %v450_v46 = vmul.f32 %v448_v43, %v843_v2 }
 0x17d   : > { %408 = vrot.lane.b32.xlu0 %v406_v36, %s778_s25 }
 0x181   : > { %421 = vrot.lane.b32.xlu0 %v419_v38, %s778_s25 }
 0x1df   : > { %v444_v45 = vpop.permute.xlu0 %443 }
 0x1e0   : > { %v446_v47 = vsub.f32 %v437_v44, %v444_v45 }
 0x1e3   : > { %v457_v48 = vpop.permute.xlu0 %456 }
 0x1e4   : > { %v459_v49 = vadd.f32 %v457_v48, %v450_v46 }
 0x1e7   : > { %v400_v50 = vpop.permute.xlu0 %399 }
 0x1e8   : > { %v402_v52 = vmul.f32 %v400_v50, %v843_v2 }
 0x1eb   : > { %v413_v51 = vpop.permute.xlu0 %412 }
 0x1ec   : > { %v415_v54 = vmul.f32 %v413_v51, %v843_v2 }
 0x1ef   : > { %v409_v53 = vpop.permute.xlu0 %408 }
 0x1f0   : > { %v411_v55 = vsub.f32 %v402_v52, %v409_v53 }
 0x1f3   : > { %v422_v56 = vpop.permute.xlu0 %421 }
 0x1f4   : > { %v424_v57 = vadd.f32 %v422_v56, %v415_v54 }
 0x23f   : > { %v305_v39 = vpop.f32.mrb[0].mxu0 }
 0x240   : > { %v719_v40 = vpop.f32.mrb[1].mxu0  ;;  %v309_v41 = vsel %vm195_vm1, %v305_v39, -inf }
 0x241   : > { %310 = vmax.xlane.f32.xlu1 %v309_v41 }
 0x252   : > { %321 = vrot.lane.b32.xlu1 %v843_v2, %s787_s5 }
 0x256   : > { %461 = vrot.lane.b32.xlu1 %v446_v47, %s788_s6 }
 0x25a   : > { %465 = vrot.lane.b32.xlu1 %v459_v49, %s789_s7 }
 0x25e   : > { %426 = vrot.lane.b32.xlu1 %v411_v55, %s790_s8 }
 0x262   : > { %430 = vrot.lane.b32.xlu1 %v424_v57, %s778_s25 }
 0x2ce   : > { %v311_v58 = vpop.xlane.xlu1 %310 }
 0x2cf   : > { %v312_v59 = vsub.f32 %v305_v39, %v311_v58 }
 0x2d1   : > { %v313_v60 = vmul.f32 1.442695, %v312_v59 }
 0x2d2   : > { %v322_v61 = vpop.permute.xlu1 %321 }
 0x2d3   : > { %759 = vpow2.f32 %v313_v60  ;;  %721 = vmatpush3.msra.mxu1 %v322_v61 }
 0x2d4   : > { %725 = vmatprep.subr.mxu1 %v779_v10 }
 0x2d6   : > { %v462_v0 = vpop.permute.xlu1 %461 }
 0x2da   : > { %v466_v3 = vpop.permute.xlu1 %465 }
 0x2db   : > { %v468_v7 = vsel %vm195_vm1, %v462_v0, %v466_v3 }
 0x2dd   : > { %v760_v62 = vpop.eup %759 }
 0x2de   : > { %v315_v63 = vsel %vm195_vm1, %v760_v62, 0.0  ;;  %v427_v4 = vpop.permute.xlu1 %426 }
 0x2df   : > { %316 = vadd.xlane.f32.xlu0 %v315_v63 }
 0x2e2   : > { %v431_v8 = vpop.permute.xlu1 %430 }
 0x2e3   : > { %v433_v9 = vsel %vm195_vm1, %v427_v4, %v431_v8 }
 0x36c   : > { %v317_v1 = vpop.xlane.xlu0 %316 }
 0x36d   : > { %761 = vrcp.f32 %v317_v1 }
 0x377   : > { %v762_v5 = vpop.eup %761 }
 0x378   : > { %v319_v6 = vmul.f32 %v762_v5, %v760_v62 }
 0x37a   : > { %723 = vmatmul.mubr.msk.f32.vlgmr.msra.gmra.mrb[0].mxu1 %vm195_vm1, %v319_v6 }
 0x37b   : > { %726 = vmatpush3.xpose.msk.msra.mxu1 %vm232_vm2, %v468_v7  ;;  %727 = vmatprep.mubr.msk.f32.mxu1 %vm780_vm0, %v779_v10 }
 0x37e   : > { %728 = vmatmul.mubr.msk.f32.vlgmr.msra.gmra.mrb[2].mxu1 %vm232_vm2, %v433_v9 }
 0x44d   : > { %v393_v11 = vpop.f32.mrb[0].mxu1 }
 0x44e   : > { %397 = vst.msk [vmem:[%s165_s11] sm:$0xff] %vm232_vm2, %v393_v11  ;;  %v724_v12 = vpop.f32.mrb[1].mxu1 }
 0x451   : > { %v541_v13 = vpop.f32.mrb[2].mxu1 }
 0x452   : > { %v729_v14 = vpop.f32.mrb[3].mxu1  ;;  %v545_v15 = vsel %vm195_vm1, %v541_v13, -inf }
 0x453   : > { %546 = vmax.xlane.f32.xlu0 %v545_v15 }
 0x469   : > { %557 = vrot.lane.b32.xlu0 %v843_v2, %s785_s30 }
 0x4e0   : > { %v547_v10 = vpop.xlane.xlu0 %546 }
 0x4e1   : > { %v548_v16 = vsub.f32 %v541_v13, %v547_v10 }
 0x4e3   : > { %v549_v17 = vmul.f32 1.442695, %v548_v16 }
 0x4e4   : > { %v558_v20 = vpop.permute.xlu0 %557 }
 0x4e5   : > { %763 = vpow2.f32 %v549_v17  ;;  %731 = vmatpush3.msra.mxu0 %v558_v20 }
 0x4ef   : > { %v764_v18 = vpop.eup %763 }
 0x4f0   : > { %v551_v19 = vsel %vm195_vm1, %v764_v18, 0.0 }
 0x4f1   : > { %552 = vadd.xlane.f32.xlu1 %v551_v19 }
 0x57e   : > { %v553_v21 = vpop.xlane.xlu1 %552 }
 0x57f   : > { %765 = vrcp.f32 %v553_v21 }
 0x589   : > { %v766_v22 = vpop.eup %765 }
 0x58a   : > { %v555_v23 = vmul.f32 %v766_v22, %v764_v18 }
 0x58c   : > { %733 = vmatmul.mubr.msk.f32.vlgmr.msra.gmra.mrb[2].mxu0 %vm195_vm1, %v555_v23 }
 0x65f   : > { %v629_v24 = vpop.f32.mrb[2].mxu0 }
 0x660   : > { %634 = vrot.lane.b32.xlu0 %v629_v24, %s786_s4  ;;  %v734_v2 = vpop.f32.mrb[3].mxu0 }
 0x6d2   : > { %v635_v25 = vpop.permute.xlu0 %634 }
 0x6d3   : > { %638 = vst.msk [vmem:[%s165_s11] sm:$0xff] %vm637_vm3, %v635_v25 }
 0x6d4 PF: > { %s13_s12 = sadd.s32 1, %s773_s12  }
 0x6d5   : > { %p10_p4 = scmp.ge.s32.totalorder %s13_s12, 4  }
 0x6d7   :  { %12 = sbr.rel (!%p10_p4) target bundleno = 1 (0x1), region = 62 }

// kernel: transformer_block_forward.5
= control target key start
LH: loop header
LB: loop body
LE: loop exit
PB: predicated region body
PF: predicated region fallthrough
CT: control target
= control target key end

     0   :  { %15 = vsyncpa [#allocation3], 0  ;;  %s1314_s0 = inlined_call_operand.vmem [shape: f32[16,32], index: 0, kind: input, shape index: {}]   ;;  %s1315_s1 = inlined_call_operand.vmem [shape: f32[16,32], index: 1, kind: input, shape index: {}]   ;;  %s1316_s2 = inlined_call_operand.vmem [shape: f32[32,32], index: 2, kind: input, shape index: {}]   ;;  %s1317_s3 = inlined_call_operand.vmem [shape: f32[1,32], index: 3, kind: input, shape index: {}]   ;;  %s1318_s4 = inlined_call_operand.vmem [shape: f32[32,64], index: 4, kind: input, shape index: {}]   ;;  %s1319_s5 = inlined_call_operand.vmem [shape: f32[1,64], index: 5, kind: input, shape index: {}]   ;;  %s1320_s6 = inlined_call_operand.vmem [shape: f32[32,64], index: 6, kind: input, shape index: {}]   ;;  %s1321_s7 = inlined_call_operand.vmem [shape: f32[1,64], index: 7, kind: input, shape index: {}]   ;;  %s1322_s8 = inlined_call_operand.vmem [shape: f32[64,32], index: 8, kind: input, shape index: {}]   ;;  %s1323_s9 = inlined_call_operand.vmem [shape: f32[1,32], index: 9, kind: input, shape index: {}]   ;;  %s1324_s10 = inlined_call_operand.hbm [shape: f32[16,32], index: 10, kind: output, shape index: {}]  }
   0x1   :  { %17 = vsyncpa [#allocation3 + $0x1], 0  ;;  %s1114_s13 = smov 0   ;;  %s1116_s14 = smov 0  }
   0x2   :  { %s1118_s15 = smov 0   ;;  %s1120_s16 = smov 0  }
   0x3 LB: > { %s1135_s17 = sadd.s32 4294967295, %s1053_s16   ;;  %s818_s18 = sadd.s32 4294967294, %s1053_s16   ;;  %s1053_s16 = sphi %s1120_s16, %s1330_s16   ;;  %s1049_s15 = sphi %s1118_s15, %s1329_s15   ;;  %s1045_s14 = sphi %s1116_s14, %s1328_s14   ;;  %s1041_s13 = sphi %s1114_s13, %s1327_s13  }
   0x4   : > { %s1139_s19 = sadd.s32 1, %s1053_s16   ;;  %s250_s20 = sadd.s32 1, %s1049_s15 }
   0x5   : > { %s247_s21 = ssub.s32 %s1053_s16, %s1139_s19  ;;  %p260_p0 = scmp.ne.s32.totalorder %s1049_s15, %s1045_s14 }
   0x6   : > { %p248_p1 = scmp.eq.s32.totalorder %s247_s21, 0  ;;  %p261_p2 = scmp.eq.s32.totalorder %s1135_s17, 1 }
   0x7   : > { %p266_p3 = scmp.ne.s32.totalorder %s1045_s14, %s1041_s13  ;;  %p267_p4 = scmp.eq.s32.totalorder %s818_s18, 1 }
   0x8   : > { %s1150_s22 = scalar_select %p248_p1, %s1049_s15, %s250_s20  }
   0x9   : > { %p1152_p5 = por %p261_p2, %p260_p0  ;;  %p1156_p6 = por %p267_p4, %p266_p3 }
   0xa   : > { %p821_p7 = scmp.ge.s32.totalorder %s1053_s16, 1  ;;  %p323_p8 = scmp.lt.s32.totalorder %s1053_s16, 3 }
   0xc   : > { %p324_p9 = pnand %p821_p7, %p323_p8 }
   0xd   : > { %v374_v0 = vld [vmem:[%s1316_s2] sm:$0xff] (!%p324_p9)  ;;  %v375_v1 = vld [vmem:[%s1316_s2 + $0x8] sm:$0xff] (!%p324_p9)  ;;  %v376_v2 = vld [vmem:[%s1316_s2 + $0x10] sm:$0xff] (!%p324_p9)  ;;  %v1055_v3 = vmov (!%p324_p9), 0.0|0.0   ;;  %vm1056_vm0 = vmmov (!%p324_p9), 0   ;;  %v1057_v6 = vmov (!%p324_p9), 0.0  }
   0xe   : > { %327 = sbr.rel (%p324_p9) target bundleno = 880 (0x370), region = 60  ;;  %913 = vmatprep.subr.bf16.mxu0 (!%p324_p9), %v1055_v3  ;;  %v914_v4 = vpack.c.bf16 (!%p324_p9), %v375_v1, %v374_v0  ;;  %v377_v5 = vld [vmem:[%s1316_s2 + $0x18] sm:$0xff] (!%p324_p9)  ;;  %869 = vmatprep.mubr.msk.f32.mxu0 (!%p324_p9), %vm1056_vm0, %v1057_v6  ;;  %p364_p10 = scmp.lt.s32.totalorder (!%p324_p9), %s1135_s17, 1  ;;  %vm378_vm1 = vcmask (!%p324_p9), 261120   ;;  %v470_v15 = vld [vmem:[%s1318_s4] sm:$0xff] (!%p324_p9)  ;;  %v471_v16 = vld [vmem:[%s1318_s4 + $0x8] sm:$0xff] (!%p324_p9) }
   0xf   : > { %919 = vmatprep.subr.bf16.mxu1 (!%p324_p9), %v1055_v3  ;;  %880 = vmatprep.mubr.msk.f32.mxu1 (!%p324_p9), %vm1056_vm0, %v1057_v6  ;;  %v917_v7 = vpack.c.bf16 (!%p324_p9), %v377_v5, %v376_v2  ;;  %v554_v17 = vld [vmem:[%s1320_s6] sm:$0xff] (!%p324_p9)  ;;  %v920_v18 = vpack.c.bf16 (!%p324_p9), %v471_v16, %v470_v15  ;;  %v555_v19 = vld [vmem:[%s1320_s6 + $0x8] sm:$0xff] (!%p324_p9)  ;;  %v472_v20 = vld [vmem:[%s1318_s4 + $0x10] sm:$0xff] (!%p324_p9)  ;;  %vm657_vm2 = vcmask (!%p324_p9), 523264   ;;  %s361_s21 = sand.u32 (!%p324_p9), 1, %s1045_s14   ;;  %s834_s28 = sshll.u32 (!%p324_p9), %s1135_s17, 7 }
  0x10   : > { %915 = vmatpush3.bf16.msra.mxu0 (!%p324_p9), %v914_v4  ;;  %v473_v21 = vld [vmem:[%s1318_s4 + $0x18] sm:$0xff] (!%p324_p9)  ;;  %v926_v22 = vpack.c.bf16 (!%p324_p9), %v555_v19, %v554_v17  ;;  %v556_v23 = vld [vmem:[%s1320_s6 + $0x10] sm:$0xff] (!%p324_p9)  ;;  %v826_v31 = vld [vmem:[%s1317_s3] ss:$0 sm:$0xff] (!%p324_p9)  ;;  %s822_s25 = sshll.u32 (!%p324_p9), %s361_s21, 3 }
  0x11   : > { %916 = vmatprep.subr.bf16.mxu0 (!%p324_p9), %v1055_v3  ;;  %v557_v24 = vld [vmem:[%s1320_s6 + $0x18] sm:$0xff] (!%p324_p9)  ;;  %921 = vmatpush3.bf16.msra.mxu1 (!%p324_p9), %v920_v18  ;;  %v923_v25 = vpack.c.bf16 (!%p324_p9), %v473_v21, %v472_v20  ;;  %v642_v34 = vld [vmem:[%s1322_s8] sm:$0xff] (!%p324_p9)  ;;  %v643_v35 = vld [vmem:[%s1322_s8 + $0x8] sm:$0xff] (!%p324_p9) }
  0x12   : > { %922 = vmatprep.subr.bf16.mxu1 (!%p324_p9), %v1055_v3  ;;  %v929_v26 = vpack.c.bf16 (!%p324_p9), %v557_v24, %v556_v23  ;;  %v932_v36 = vpack.c.bf16 (!%p324_p9), %v643_v35, %v642_v34  ;;  %v644_v37 = vld [vmem:[%s1322_s8 + $0x10] sm:$0xff] (!%p324_p9)  ;;  %v645_v38 = vld [vmem:[%s1322_s8 + $0x18] sm:$0xff] (!%p324_p9)  ;;  %v646_v40 = vld [vmem:[%s1322_s8 + $0x20] sm:$0xff] (!%p324_p9) }
  0x13   : > { %v935_v39 = vpack.c.bf16 (!%p324_p9), %v645_v38, %v644_v37  ;;  %v647_v41 = vld [vmem:[%s1322_s8 + $0x28] sm:$0xff] (!%p324_p9)  ;;  %v648_v43 = vld [vmem:[%s1322_s8 + $0x30] sm:$0xff] (!%p324_p9)  ;;  %v649_v44 = vld [vmem:[%s1322_s8 + $0x38] sm:$0xff] (!%p324_p9) }
  0x14   : > { %918 = vmatpush3.bf16.msra.mxu0 (!%p324_p9), %v917_v7  ;;  %v938_v42 = vpack.c.bf16 (!%p324_p9), %v647_v41, %v646_v40  ;;  %v941_v45 = vpack.c.bf16 (!%p324_p9), %v649_v44, %v648_v43  ;;  %v827_v46 = vld [vmem:[%s1319_s5] ss:$0 sm:$0xff] (!%p324_p9) }
  0x15   : > { %s365_s18 = scalar_select %p364_p10, %s1135_s17, 1  ;;  %925 = vmatprep.subr.bf16.mxu0 %v1055_v3  ;;  %924 = vmatpush3.bf16.msra.mxu1 %v923_v25  ;;  %v829_v56 = vld [vmem:[%s1321_s7] ss:$0 sm:$0xff] }
  0x16   : > { %931 = vmatprep.subr.bf16.mxu1 %v1055_v3  ;;  %v831_v61 = vld [vmem:[%s1323_s9] ss:$0 sm:$0xff] }
  0x17   : > { %s823_s20 = sshll.u32 %s365_s18, 3  ;;  %s1271_s18 = scalar_lea.hbm %s1324_s10, %s834_s28 }
  0x18   : > { %s371_s26 = scalar_lea.vmem %s1315_s1, %s823_s20  ;;  %s367_s29 = scalar_lea.vmem %s1314_s0, %s823_s20 }
  0x19   : > { %v373_v8 = vld [vmem:[%s371_s26] sm:$0xff]  ;;  %s734_s20 = scalar_lea.sflag [#allocation3], %s361_s21 }
  0x1a   : > { %870 = vmatmul.mubr.msk.f32.vlgmr.msra.gmra.mrb[0].mxu0 %vm378_vm1, %v373_v8  ;;  %v372_v9 = vld [vmem:[%s367_s29] sm:$0xff]  ;;  %s363_s29 = scalar_lea.vmem [#allocation2], %s822_s25  ;;  %s1058_s25 = smov [#allocation2]  }
  0x1b   : > { %891 = vmatprep.mubr.msk.f32.mxu0 %vm1056_vm0, %v1057_v6  ;;  %927 = vmatpush3.bf16.msra.mxu0 %v926_v22  ;;  %s747_s30 = sshll.u32 %s363_s29, 4  ;;  %s995_s26 = sshll.u32 %s1058_s25, 4  ;;  %s1273_s30 = int_to_ptr.vmem [resolvable:$true] %s747_s30  ;;  %s996_s26 = int_to_ptr.vmem [resolvable:$false] %s995_s26 }
  0x1c   : > { %928 = vmatprep.subr.bf16.mxu0 %v1055_v3  ;;  %s991_s17 = scalar_lea.vmem %s1273_s30, 128  ;;  %s997_s27 = scalar_lea.vmem %s996_s26, 256 }
  0x1d   : > { %p992_p11 = scmp.ne.s32.totalorder %s1273_s30, %s991_s17  ;;  %p998_p0 = scmp.lt.s32.totalorder %s1273_s30, %s996_s26 }
  0x1e   : > { %p999_p1 = scmp.lt.s32.totalorder %s997_s27, %s991_s17 }
  0x1f   : > { %930 = vmatpush3.bf16.msra.mxu0 %v929_v26  ;;  %p993_p12 = pnand %p992_p11, %p1152_p5 }
  0x20   : > { %p1000_p2 = por %p999_p1, %p998_p0 }
  0x21   : > { %p994_p13 = pneg %p993_p12 }
  0x23   : > { %p1001_p3 = pnand %p1000_p2, %p994_p13 }
  0xed   : > { %v448_v10 = vpop.f32.mrb[0].mxu0 }
  0xee   : > { %v1190_v11 = vadd.f32 %v448_v10, %v372_v9  ;;  %v871_v12 = vpop.f32.mrb[1].mxu0 }
  0xf0   : > { %v453_v13 = vmul.f32 %v1190_v11, %v1190_v11 }
  0xf2   : > { %v454_v14 = vsel %vm378_vm1, %v453_v13, 0.0 }
  0xf3   : > { %455 = vadd.xlane.f32.xlu0 %v454_v14 }
 0x180   : > { %v456_v27 = vpop.xlane.xlu0 %455 }
 0x181   : > { %v458_v28 = vmul.f32 0.03125, %v456_v27 }
 0x183   : > { %v459_v29 = vadd.f32 1e-06, %v458_v28 }
 0x185   : > { %985 = vrsqrt.f32 %v459_v29 }
 0x18f   : > { %v986_v30 = vpop.eup %985 }
 0x190   : > { %v461_v32 = vmul.f32 %v986_v30, %v1190_v11 }
 0x192   : > { %v469_v33 = vmul.f32 %v826_v31, %v461_v32 }
 0x194   : > { %881 = vmatmul.mubr.msk.f32.vlgmr.msra.gmra.mrb[0].mxu1 %vm378_vm1, %v469_v33  ;;  %892 = vmatmul.mubr.msk.f32.vlgmr.msra.gmra.mrb[2].mxu0 %vm378_vm1, %v469_v33 }
 0x195   : > { %910 = vmatprep.mubr.msk.f32.mxu1 %vm1056_vm0, %v1057_v6  ;;  %933 = vmatpush3.bf16.msra.mxu1 %v932_v36 }
 0x196   : > { %934 = vmatprep.subr.bf16.mxu1 %v1055_v3 }
 0x199   : > { %936 = vmatpush3.bf16.msra.mxu1 %v935_v39 }
 0x19a   : > { %937 = vmatprep.subr.bf16.mxu1 %v1055_v3 }
 0x19d   : > { %939 = vmatpush3.bf16.msra.mxu1 %v938_v42 }
 0x19e   : > { %940 = vmatprep.subr.bf16.mxu1 %v1055_v3 }
 0x1a1   : > { %942 = vmatpush3.bf16.msra.mxu1 %v941_v45 }
 0x267   : > { %v550_v47 = vpop.f32.mrb[0].mxu1  ;;  %v631_v48 = vpop.f32.mrb[2].mxu0 }
 0x268   : > { %v551_v49 = vadd.f32 %v827_v46, %v550_v47  ;;  %v882_v50 = vpop.f32.mrb[1].mxu1  ;;  %v893_v51 = vpop.f32.mrb[3].mxu0  ;;  %v632_v59 = vadd.f32 %v829_v56, %v631_v48 }
 0x26a   : > { %v635_v52 = vsub.f32 0.0, %v551_v49 }
 0x26c   : > { %v636_v53 = vmul.f32 1.442695, %v635_v52 }
 0x26e   : > { %987 = vpow2.f32 %v636_v53 }
 0x278   : > { %v988_v54 = vpop.eup %987 }
 0x279   : > { %v638_v55 = vadd.f32 1.0, %v988_v54 }
 0x27b   : > { %989 = vrcp.f32 %v638_v55 }
 0x285   : > { %v990_v57 = vpop.eup %989 }
 0x286   : > { %v640_v58 = vmul.f32 %v990_v57, %v551_v49 }
 0x288   : > { %v641_v60 = vmul.f32 %v640_v58, %v632_v59 }
 0x28a   : > { %911 = vmatmul.mubr.msk.f32.vlgmr.msra.gmra.mrb[2].mxu1 %vm657_vm2, %v641_v60 }
 0x35d   : > { %v727_v62 = vpop.f32.mrb[2].mxu1 }
 0x35e   : > { %v728_v63 = vadd.f32 %v831_v61, %v727_v62  ;;  %v912_v0 = vpop.f32.mrb[3].mxu1 }
 0x360   : > { %v731_v1 = vadd.f32 %v728_v63, %v1190_v11 }
 0x362   : > { %732 = vst.msk [vmem:[%s363_s29] sm:$0xff] %vm378_vm1, %v731_v1 }
 0x363   : > { %1004 = shalt.err (!%p1001_p3)
}
 0x364   : > { %s1005_s21 = scalar_lea.hbm %s1271_s18, 128  ;;  %s1009_s11 = scalar_lea.hbm %s1324_s10, 256 }
 0x365   : > { %p1006_p4 = scmp.ne.s32.totalorder %s1271_s18, %s1005_s21  ;;  %p1010_p9 = scmp.lt.u32.totalorder %s1271_s18, %s1324_s10 }
 0x366   : > { %p1011_p10 = scmp.lt.u32.totalorder %s1009_s11, %s1005_s21  ;;  %p1013_p12 = scmp.lt.u32.totalorder %s1005_s21, %s1271_s18 }
 0x367   : > { %p1007_p7 = pnand %p1006_p4, %p1152_p5 }
 0x368   : > { %p1012_p11 = por %p1011_p10, %p1010_p9 }
 0x369   : > { %p1008_p8 = pneg %p1007_p7 }
 0x36a   : > { %p1014_p13 = por %p1013_p12, %p1012_p11 }
 0x36c   : > { %p1015_p0 = pnand %p1014_p13, %p1008_p8 }
 0x36e   : > { %1018 = shalt.err (!%p1015_p0)
}
 0x36f   : > { %943 = dma.vmem_to_hbm [thread:$0]  (%p1152_p5), %s1273_s30, 128, %s1271_s18, %s734_s20  }
 0x370 PF: > { %p949_p1 = scmp.ge.s32.totalorder %s1053_s16, 2  ;;  %s759_s17 = sand.u32 1, %s1041_s13  }
 0x371   : > { %s760_s26 = scalar_lea.sflag [#allocation3], %s759_s17 }
 0x372   : > { %p946_p2 = pnand %p949_p1, %p1156_p6 }
 0x374   : > { %1036 = dma.done.wait (!%p946_p2), %s760_s26, 128  }
 0x375   : > { %1038 = vsyncadd (!%p946_p2), %s760_s26, 4294967168  ;;  %p20_p3 = scmp.ge.s32.totalorder %s1139_s19, 4   ;;  %s1327_s13 = smov %s1045_s14 }
 0x376   : > { %s1328_s14 = smov %s1049_s15  ;;  %s1329_s15 = smov %s1150_s22 }
 0x377   : > { %s1330_s16 = smov %s1139_s19  ;;  %22 = sbr.rel (!%p20_p3) target bundleno = 3 (0x3), region = 98 }
 0x37e   :  { %765 = vsyncpa [#allocation3], 1 }
 0x37f   :  { %767 = vsyncpa [#allocation3 + $0x1], 1 }

</bundles_post_ra>
